<compile_context>
chip_gen: v5e
topology: v5e:2x2
jax: 0.10.0
libtpu: 0.0.40
codegen_flags: <defaults>
</compile_context>

<pallas_src>
import functools

import jax
import jax.numpy as jnp
from jax import lax
from jax.experimental import pallas as pl
from jax.experimental.pallas import tpu as pltpu


def _attention_kernel(q_ref, val_ref, lens_ref, wq_ref, wv_ref, vvec_ref, o_ref,
                      *, use_bf16: bool):
    """One grid step == TB batch rows.

    q_ref    : VMEM [TB, Dq]     f32
    val_ref  : VMEM [TB, N, Dv]  f32
    lens_ref : VMEM [TB, 1]      int32
    wq_ref   : VMEM [D, Dq]      f32   (W[:, :Dq])
    wv_ref   : VMEM [D, Dv]      f32   (W[:, Dq:])
    vvec_ref : VMEM [1, D]       f32
    o_ref    : VMEM [TB, N]      f32
    """
    TB, N, Dv = val_ref.shape
    D = wq_ref.shape[0]

    q = q_ref[...]                                   # [TB, Dq]
    val = val_ref[...].reshape(TB * N, Dv)           # flatten -> one big MXU matmul
    wq = wq_ref[...]
    wv = wv_ref[...]
    if use_bf16:
        q = q.astype(jnp.bfloat16)
        val = val.astype(jnp.bfloat16)
        wq = wq.astype(jnp.bfloat16)
        wv = wv.astype(jnp.bfloat16)

    # PyTorch:  tanh( concat(q, val) @ W^T )  ==  tanh( val @ Wv^T + q @ Wq^T )
    q_proj = lax.dot_general(                        # [TB, D]
        q, wq, dimension_numbers=(((1,), (1,)), ((), ())),
        preferred_element_type=jnp.float32)
    v_proj = lax.dot_general(                        # [TB*N, D]
        val, wv, dimension_numbers=(((1,), (1,)), ((), ())),
        preferred_element_type=jnp.float32)

    scores = jnp.tanh(v_proj.reshape(TB, N, D) + q_proj[:, None, :])   # [TB, N, D] f32

    # s[b, n] = sum_d v[d] * scores[b, n, d]   (VPU multiply + XLU lane reduction)
    s = jnp.sum(scores * vvec_ref[...][None, :, :], axis=-1)           # [TB, N]

    # Length mask: keep positions 1..lens[b], others -> -99999 (as in the module).
    lens_b = lens_ref[...]                                             # [TB, 1] int32
    pos = lax.broadcasted_iota(jnp.int32, (TB, N), 1) + 1              # [TB, N], 1..N
    masked = jnp.where(pos <= lens_b, s, jnp.float32(-99999.0))

    # Softmax over the sequence (lane) axis.
    m = jnp.max(masked, axis=-1, keepdims=True)
    e = jnp.exp(masked - m)
    denom = jnp.sum(e, axis=-1, keepdims=True)
    o_ref[...] = (e * pl.reciprocal(denom, approx=True)).astype(o_ref.dtype)


def _pick_block_b(B8, N, Dq, Dv, D, block_b=None):
    """Choose the batch-block size (multiple of 8) from a ~8 MiB per-step VMEM budget."""
    if block_b is not None:
        return max(8, (int(block_b) // 8) * 8)
    bytes_per_row = 4 * (2 * (N * Dv + Dq + 1)   # double-buffered input tiles
                         + 3 * N * D             # f32 elementwise intermediates
                         + 2 * N)                # double-buffered output tile
    budget = 8 * 1024 * 1024
    tb = (budget // max(bytes_per_row, 1)) // 8 * 8
    return max(8, min(B8, 512, tb))


def attention_layer_forward(query, value, lens, W, v_param, *, use_bf16=False, block_b=None):
    """Pallas implementation of AttentionLayer.forward.

    query : [B, 1, Dq] f32
    value : [B, N, Dv] f32
    lens  : [B] int
    W     : [D, D] f32  (D = Dq + Dv, PyTorch Linear weight [out, in])
    v_param : [1, D] f32
    returns: [B, 1, N] f32
    """
    # TODO(synk): the query=None / query_as_parameter branch and the query-batch-repeat branch
    # of the module are not implemented; callers must pass an explicit per-batch query tensor.
    B, N, Dv = value.shape
    Dq = query.shape[-1]
    D = Dq + Dv
    assert W.shape == (D, D)
    assert v_param.shape == (1, D)

    # Split W so concat(query, value) @ W^T becomes q @ Wq^T + value @ Wv^T.
    Wq = W[:, :Dq].astype(jnp.float32)               # [D, Dq]
    Wv = W[:, Dq:].astype(jnp.float32)               # [D, Dv]

    # Batch blocking: pad B to a multiple of TB, process TB rows per grid step.
    B8 = 8 * pl.cdiv(B, 8)
    TB = _pick_block_b(B8, N, Dq, Dv, D, block_b)
    B_pad = TB * pl.cdiv(B8, TB)
    grid = (B_pad // TB,)

    q2 = query.reshape(B, Dq).astype(jnp.float32)    # drop singleton dim in the wrapper
    val = value.astype(jnp.float32)
    lens2 = lens.astype(jnp.int32).reshape(B, 1)
    pad = B_pad - B
    if pad:
        q2 = jnp.pad(q2, ((0, pad), (0, 0)))
        val = jnp.pad(val, ((0, pad), (0, 0), (0, 0)))
        lens2 = jnp.pad(lens2, ((0, pad), (0, 0)))   # padded rows: lens=0 -> fully masked, discarded

    kernel = functools.partial(_attention_kernel, use_bf16=use_bf16)

    out = pl.pallas_call(
        kernel,
        out_shape=jax.ShapeDtypeStruct((B_pad, N), jnp.float32),
        grid_spec=pltpu.PrefetchScalarGridSpec(
            num_scalar_prefetch=0,
            grid=grid,
            in_specs=[
                pl.BlockSpec((TB, Dq), lambda b: (b, 0)),
                pl.BlockSpec((TB, N, Dv), lambda b: (b, 0, 0)),
                pl.BlockSpec((TB, 1), lambda b: (b, 0)),
                # Constant index_maps -> weights / v fetched once, VMEM-resident.
                pl.BlockSpec((D, Dq), lambda b: (0, 0)),
                pl.BlockSpec((D, Dv), lambda b: (0, 0)),
                pl.BlockSpec((1, D), lambda b: (0, 0)),
            ],
            out_specs=pl.BlockSpec((TB, N), lambda b: (b, 0)),
        ),
        compiler_params=pltpu.CompilerParams(
            dimension_semantics=("parallel",),       # grid steps independent -> megacore shardable
        ),
    )(q2, val, lens2, Wq, Wv, v_param.astype(jnp.float32))

    return out[:B].reshape(B, 1, N)


def _reference_forward(query, value, lens, W, v_param):
    """Pure-JAX reference mirroring the PyTorch module."""
    B, N, Dv = value.shape
    q = jnp.broadcast_to(query, (B, N, query.shape[-1]))
    x = jnp.concatenate([q, value], axis=-1)                      # [B, N, D]
    scores = jnp.tanh(jnp.einsum("bnd,od->bno", x, W))            # [B, N, D]
    s = jnp.einsum("od,bnd->bon", v_param, scores)                # [B, 1, N]
    pos = jnp.arange(1, N + 1)[None, None, :]                     # [1, 1, N]
    mask = pos <= lens[:, None, None]
    s = jnp.where(mask, s, -99999.0)
    return jax.nn.softmax(s, axis=-1)


if __name__ == "__main__":
    key = jax.random.PRNGKey(0)
    k_q, k_v, k_w, k_vp, k_q2, k_v2, k_l2 = jax.random.split(key, 7)

    # Small test (module-consistent shapes): B=2, N=8, Dq=Dv=16 -> D=32.
    B, N, Dq, Dv = 2, 8, 16, 16
    D = Dq + Dv

    query = jax.random.normal(k_q, (B, 1, Dq), dtype=jnp.float32)
    value = jax.random.normal(k_v, (B, N, Dv), dtype=jnp.float32)
    lens = jnp.array([N, 5], dtype=jnp.int32)                     # lens.max() == N

    W = jax.random.normal(k_w, (D, D), dtype=jnp.float32) * (1.0 / jnp.sqrt(D))
    v_param = jax.random.normal(k_vp, (1, D), dtype=jnp.float32)

    out = jax.block_until_ready(attention_layer_forward(query, value, lens, W, v_param))
    ref = _reference_forward(query, value, lens, W, v_param)
    assert out.shape == (B, 1, N)
    assert jnp.allclose(out, ref, atol=2e-3, rtol=2e-3), "f32 kernel mismatch vs reference"

    # bf16 MXU-input variant (v6e/v7x fast path), looser tolerance.
    out_bf16 = jax.block_until_ready(
        attention_layer_forward(query, value, lens, W, v_param, use_bf16=True))
    assert jnp.allclose(out_bf16, ref, atol=6e-2, rtol=6e-2), "bf16 kernel mismatch vs reference"

    # Larger batch, adaptive block size (single large block here).
    B2 = 40
    query2 = jax.random.normal(k_q2, (B2, 1, Dq), dtype=jnp.float32)
    value2 = jax.random.normal(k_v2, (B2, N, Dv), dtype=jnp.float32)
    lens2 = jax.random.randint(k_l2, (B2,), 1, N + 1).astype(jnp.int32)
    lens2 = lens2.at[0].set(N)                                    # keep lens.max() == N
    out2 = jax.block_until_ready(attention_layer_forward(query2, value2, lens2, W, v_param))
    ref2 = _reference_forward(query2, value2, lens2, W, v_param)
    assert out2.shape == (B2, 1, N)
    assert jnp.allclose(out2, ref2, atol=2e-3, rtol=2e-3), "batched kernel mismatch vs reference"

    # Same inputs with an explicit small block: exercises batch padding + a multi-step
    # (megacore-shardable) grid path.
    out3 = jax.block_until_ready(
        attention_layer_forward(query2, value2, lens2, W, v_param, block_b=16))
    assert jnp.allclose(out3, ref2, atol=2e-3, rtol=2e-3), "multi-block kernel mismatch vs reference"

    print("KERNEL_OK")
</pallas_src>

<mosaic_0001>
module attributes {stable_mosaic.version = 11 : i64} {
  func.func @_attention_kernel(%arg0: i32, %arg1: memref<8x16xf32, #tpu.memory_space<vmem>>, %arg2: memref<8x8x16xf32, #tpu.memory_space<vmem>>, %arg3: memref<8x1xi32, #tpu.memory_space<vmem>>, %arg4: memref<32x16xf32, #tpu.memory_space<vmem>>, %arg5: memref<32x16xf32, #tpu.memory_space<vmem>>, %arg6: memref<1x32xf32, #tpu.memory_space<vmem>>, %arg7: memref<8x8xf32, #tpu.memory_space<vmem>>) attributes {dimension_semantics = [#tpu.dimension_semantics<parallel>], iteration_bounds = array<i64: 1>, scalar_prefetch = 0 : i64, scratch_operands = 0 : i64, tpu.core_type = #tpu.core_type<tc>, window_params = [{transform_indices = @transform_0, window_bounds = array<i64: 8, 16>}, {transform_indices = @transform_1, window_bounds = array<i64: 8, 8, 16>}, {transform_indices = @transform_2, window_bounds = array<i64: 8, 1>}, {pipeline_mode = #tpu.pipeline_mode<synchronous>, transform_indices = @transform_3, window_bounds = array<i64: 32, 16>}, {pipeline_mode = #tpu.pipeline_mode<synchronous>, transform_indices = @transform_4, window_bounds = array<i64: 32, 16>}, {pipeline_mode = #tpu.pipeline_mode<synchronous>, transform_indices = @transform_5, window_bounds = array<i64: 1, 32>}, {transform_indices = @transform_6, window_bounds = array<i64: 8, 8>}]} {
    %c0 = arith.constant 0 : index
    %c0_0 = arith.constant 0 : index
    %0 = vector.load %arg1[%c0, %c0_0] : memref<8x16xf32, #tpu.memory_space<vmem>>, vector<8x16xf32>
    %c0_1 = arith.constant 0 : index
    %c0_2 = arith.constant 0 : index
    %c0_3 = arith.constant 0 : index
    %1 = vector.load %arg2[%c0_1, %c0_2, %c0_3] : memref<8x8x16xf32, #tpu.memory_space<vmem>>, vector<8x8x16xf32>
    %2 = vector.shape_cast %1 : vector<8x8x16xf32> to vector<64x16xf32>
    %c0_4 = arith.constant 0 : index
    %c0_5 = arith.constant 0 : index
    %3 = vector.load %arg4[%c0_4, %c0_5] : memref<32x16xf32, #tpu.memory_space<vmem>>, vector<32x16xf32>
    %c0_6 = arith.constant 0 : index
    %c0_7 = arith.constant 0 : index
    %4 = vector.load %arg5[%c0_6, %c0_7] : memref<32x16xf32, #tpu.memory_space<vmem>>, vector<32x16xf32>
    %cst = arith.constant dense<0.000000e+00> : vector<8x32xf32>
    %5 = tpu.matmul %0, %3, %cst {dimension_numbers = #tpu.dot_dimension_numbers<[1], [1], [0], [0], [0, 0, 1, 0], [], []>} : vector<8x16xf32>, vector<32x16xf32>, vector<8x32xf32> -> vector<8x32xf32>
    %cst_8 = arith.constant dense<0.000000e+00> : vector<64x32xf32>
    %6 = tpu.matmul %2, %4, %cst_8 {dimension_numbers = #tpu.dot_dimension_numbers<[1], [1], [0], [0], [0, 0, 1, 0], [], []>} : vector<64x16xf32>, vector<32x16xf32>, vector<64x32xf32> -> vector<64x32xf32>
    %7 = vector.shape_cast %6 : vector<64x32xf32> to vector<8x8x32xf32>
    %8 = vector.shape_cast %5 : vector<8x32xf32> to vector<8x1x32xf32>
    %9 = vector.broadcast %8 : vector<8x1x32xf32> to vector<8x8x32xf32>
    %10 = arith.addf %7, %9 : vector<8x8x32xf32>
    %11 = math.tanh %10 : vector<8x8x32xf32>
    %c0_9 = arith.constant 0 : index
    %c0_10 = arith.constant 0 : index
    %12 = vector.load %arg6[%c0_9, %c0_10] : memref<1x32xf32, #tpu.memory_space<vmem>>, vector<1x32xf32>
    %13 = vector.shape_cast %12 : vector<1x32xf32> to vector<1x1x32xf32>
    %14 = vector.broadcast %13 : vector<1x1x32xf32> to vector<8x8x32xf32>
    %15 = arith.mulf %11, %14 : vector<8x8x32xf32>
    %cst_11 = arith.constant dense<0.000000e+00> : vector<8x8xf32>
    %16 = vector.multi_reduction <add>, %15, %cst_11 [2] : vector<8x8x32xf32> to vector<8x8xf32>
    %c0_12 = arith.constant 0 : index
    %c0_13 = arith.constant 0 : index
    %17 = vector.load %arg3[%c0_12, %c0_13] : memref<8x1xi32, #tpu.memory_space<vmem>>, vector<8x1xi32>
    %18 = tpu.iota {dimensions = array<i32: 1>} : vector<8x8xi32>
    %c1_i32 = arith.constant 1 : i32
    %19 = vector.broadcast %c1_i32 : i32 to vector<8x8xi32>
    %20 = arith.addi %18, %19 : vector<8x8xi32>
    %21 = vector.broadcast %17 : vector<8x1xi32> to vector<8x8xi32>
    %22 = arith.cmpi sle, %20, %21 : vector<8x8xi32>
    %cst_14 = arith.constant -9.999900e+04 : f32
    %23 = vector.broadcast %cst_14 : f32 to vector<8x8xf32>
    %24 = arith.select %22, %16, %23 : vector<8x8xi1>, vector<8x8xf32>
    %cst_15 = arith.constant dense<0xFF800000> : vector<8xf32>
    %25 = vector.multi_reduction <maximumf>, %24, %cst_15 [1] : vector<8x8xf32> to vector<8xf32>
    %26 = vector.shape_cast %25 : vector<8xf32> to vector<8x1xf32>
    %27 = vector.broadcast %26 : vector<8x1xf32> to vector<8x8xf32>
    %28 = arith.subf %24, %27 : vector<8x8xf32>
    %29 = math.exp %28 : vector<8x8xf32>
    %cst_16 = arith.constant dense<0.000000e+00> : vector<8xf32>
    %30 = vector.multi_reduction <add>, %29, %cst_16 [1] : vector<8x8xf32> to vector<8xf32>
    %31 = vector.shape_cast %30 : vector<8xf32> to vector<8x1xf32>
    %32 = tpu.reciprocal %31 {approx = true} : vector<8x1xf32> -> vector<8x1xf32>
    %33 = vector.broadcast %32 : vector<8x1xf32> to vector<8x8xf32>
    %34 = arith.mulf %29, %33 : vector<8x8xf32>
    %c0_17 = arith.constant 0 : index
    %c0_18 = arith.constant 0 : index
    %35 = vector.load %arg7[%c0_17, %c0_18] : memref<8x8xf32, #tpu.memory_space<vmem>>, vector<8x8xf32>
    tpu.vector_store %arg7[%c0_17, %c0_18], %34 {strides = array<i32>} : memref<8x8xf32, #tpu.memory_space<vmem>>, vector<8x8xf32>,
    return
  }
  func.func @transform_0(%arg0: i32) -> (i32, i32) {
    %c0_i32 = arith.constant 0 : i32
    %c0_i32_0 = arith.constant 0 : i32
    return %arg0, %c0_i32 : i32, i32
  }
  func.func @transform_1(%arg0: i32) -> (i32, i32, i32) {
    %c0_i32 = arith.constant 0 : i32
    %c0_i32_0 = arith.constant 0 : i32
    %c0_i32_1 = arith.constant 0 : i32
    return %arg0, %c0_i32, %c0_i32_0 : i32, i32, i32
  }
  func.func @transform_2(%arg0: i32) -> (i32, i32) {
    %c0_i32 = arith.constant 0 : i32
    %c0_i32_0 = arith.constant 0 : i32
    return %arg0, %c0_i32 : i32, i32
  }
  func.func @transform_3(%arg0: i32) -> (i32, i32) {
    %c0_i32 = arith.constant 0 : i32
    %c0_i32_0 = arith.constant 0 : i32
    %c0_i32_1 = arith.constant 0 : i32
    return %c0_i32, %c0_i32_0 : i32, i32
  }
  func.func @transform_4(%arg0: i32) -> (i32, i32) {
    %c0_i32 = arith.constant 0 : i32
    %c0_i32_0 = arith.constant 0 : i32
    %c0_i32_1 = arith.constant 0 : i32
    return %c0_i32, %c0_i32_0 : i32, i32
  }
  func.func @transform_5(%arg0: i32) -> (i32, i32) {
    %c0_i32 = arith.constant 0 : i32
    %c0_i32_0 = arith.constant 0 : i32
    %c0_i32_1 = arith.constant 0 : i32
    return %c0_i32, %c0_i32_0 : i32, i32
  }
  func.func @transform_6(%arg0: i32) -> (i32, i32) {
    %c0_i32 = arith.constant 0 : i32
    %c0_i32_0 = arith.constant 0 : i32
    return %arg0, %c0_i32 : i32, i32
  }
}

</mosaic_0001>

<bundles_post_ra>
// kernel: tpu_custom_call.1
= control target key start
LH: loop header
LB: loop body
LE: loop exit
PB: predicated region body
PF: predicated region fallthrough
CT: control target
= control target key end

     0   :  { %vm41_vm0 = vcmask 130048   ;;  %s509_s0 = inlined_call_operand.vmem [shape: f32[8,16], index: 0, kind: input, shape index: {}]   ;;  %s510_s1 = inlined_call_operand.vmem [shape: f32[8,8,16], index: 1, kind: input, shape index: {}]   ;;  %s511_s2 = inlined_call_operand.vmem [shape: s32[8,1], index: 2, kind: input, shape index: {}]   ;;  %s512_s3 = inlined_call_operand.vmem [shape: f32[32,16], index: 3, kind: input, shape index: {}]   ;;  %s513_s4 = inlined_call_operand.vmem [shape: f32[32,16], index: 4, kind: input, shape index: {}]   ;;  %s514_s5 = inlined_call_operand.vmem [shape: f32[1,32], index: 5, kind: input, shape index: {}]   ;;  %s515_s6 = inlined_call_operand.hbm [shape: f32[8,8], index: 6, kind: output, shape index: {}]  }
   0x1   :  { %v36_v0 = vld [vmem:[%s512_s3 + $0x18] sm:$0xff]  ;;  %v35_v2 = vld [vmem:[%s512_s3 + $0x10] sm:$0xff]  ;;  %v34_v4 = vld [vmem:[%s512_s3 + $0x8] sm:$0xff] }
   0x2   :  { %v40_v1 = vld [vmem:[%s513_s4 + $0x18] sm:$0xff]  ;;  %300 = vmatpush.xpose.msk.msra.mxu0 %vm41_vm0, %v36_v0  ;;  %v39_v3 = vld [vmem:[%s513_s4 + $0x10] sm:$0xff]  ;;  %v38_v5 = vld [vmem:[%s513_s4 + $0x8] sm:$0xff] }
   0x3   :  { %317 = vmatpush.xpose.msk.msra.mxu2 %vm41_vm0, %v40_v1  ;;  %318 = vmatpush.xpose.msk.msra.mxu3 %vm41_vm0, %v40_v1 }
   0x4   :  { %305 = vmatpush.xpose.msk.msra.mxu1 %vm41_vm0, %v40_v1 }
   0x6   :  { %301 = vmatpush.xpose.msk.msra.mxu0 %vm41_vm0, %v35_v2 }
   0x7   :  { %319 = vmatpush.xpose.msk.msra.mxu2 %vm41_vm0, %v39_v3  ;;  %320 = vmatpush.xpose.msk.msra.mxu3 %vm41_vm0, %v39_v3 }
   0x8   :  { %306 = vmatpush.xpose.msk.msra.mxu1 %vm41_vm0, %v39_v3 }
   0x9   :  { %11 = vsyncpa [#allocation3], 0  ;;  %v33_v6 = vld [vmem:[%s512_s3] sm:$0xff]  ;;  %v27_v9 = vld [vmem:[%s510_s1 + $0x10] sm:$0xff]  ;;  %v376_v28 = vmov 0   ;;  %vm206_vm1 = vcmask 261120  }
   0xa   :  { %302 = vmatpush.xpose.msk.msra.mxu0 %vm41_vm0, %v34_v4  ;;  %v37_v7 = vld [vmem:[%s513_s4] sm:$0xff]  ;;  %v30_v10 = vld [vmem:[%s510_s1 + $0x28] sm:$0xff]  ;;  %v28_v12 = vld [vmem:[%s510_s1 + $0x18] sm:$0xff]  ;;  %327 = vset.pattern.permute.xlu2 %v376_v28  ;;  %vm255_vm2 = vcmask 1041409   ;;  %vm257_vm3 = vcmask 1042434   ;;  %vm259_vm4 = vcmask 1043459  }
   0xb   :  { %321 = vmatpush.xpose.msk.msra.mxu2 %vm41_vm0, %v38_v5  ;;  %322 = vmatpush.xpose.msk.msra.mxu3 %vm41_vm0, %v38_v5  ;;  %v24_v8 = vld [vmem:[%s509_s0] sm:$0xff]  ;;  %v31_v13 = vld [vmem:[%s510_s1 + $0x30] sm:$0xff]  ;;  %v26_v14 = vld [vmem:[%s510_s1 + $0x8] sm:$0xff]  ;;  %vm261_vm5 = vcmask 1044484   ;;  %vm263_vm6 = vcmask 1045509   ;;  %vm265_vm7 = vcmask 1046534  }
   0xc   :  { %307 = vmatpush.xpose.msk.msra.mxu1 %vm41_vm0, %v38_v5  ;;  %v25_v11 = vld [vmem:[%s510_s1] sm:$0xff]  ;;  %v32_v16 = vld [vmem:[%s510_s1 + $0x38] sm:$0xff]  ;;  %328 = vset.pattern.permute.xlu0 %v376_v28  ;;  %vm267_vm8 = vcmask 1047559   ;;  %vm271_vm9 = vcmask 64512   ;;  %s291_s9 = sshll.u32 %s515_s6, 4  ;;  %s292_s9 = int_to_ptr.hbm [resolvable:$true] %s291_s9 }
   0xd   :  { %v29_v15 = vld [vmem:[%s510_s1 + $0x20] sm:$0xff] }
   0xe   :  { %303 = vmatpush.xpose.msk.msra.mxu0 %vm41_vm0, %v33_v6  ;;  %v329_v32 = vld [vmem:[%s514_s5] ss:$0 sm:$0xff] }
   0xf   :  { %323 = vmatpush.xpose.msk.msra.mxu2 %vm41_vm0, %v37_v7  ;;  %324 = vmatpush.xpose.msk.msra.mxu3 %vm41_vm0, %v37_v7 }
  0x10   :  { %308 = vmatpush.xpose.msk.msra.mxu1 %vm41_vm0, %v37_v7 }
  0x11   :  { %304 = vmatmul.msk.f32.vlgmr.msra.gmra.mxu0 %vm41_vm0, %v24_v8 }
  0x12   :  { %311 = vmatmul.msk.f32.vlgmr.msra.gmra.mxu2 %vm41_vm0, %v27_v9  ;;  %314 = vmatmul.msk.f32.vlgmr.msra.gmra.mxu3 %vm41_vm0, %v30_v10 }
  0x13   :  { %309 = vmatmul.msk.f32.vlgmr.msra.gmra.mxu1 %vm41_vm0, %v25_v11  ;;  %v231_v11 = vld [vmem:[%s511_s2] sm:$0xff]  ;;  %s377_s2 = smov [#allocation2]  }
  0x14   :  { %s289_s30 = sshll.u32 %s377_s2, 4  ;;  %s290_s30 = int_to_ptr.vmem [resolvable:$true] %s289_s30 }
  0x1a   :  { %312 = vmatmul.msk.f32.gmra.mxu2 %vm41_vm0, %v28_v12  ;;  %315 = vmatmul.msk.f32.gmra.mxu3 %vm41_vm0, %v31_v13 }
  0x1b   :  { %310 = vmatmul.msk.f32.gmra.mxu1 %vm41_vm0, %v26_v14  ;;  %v232_v14 = vlaneseq }
  0x22   :  { %313 = vmatmul.msk.f32.gmra.mxu2 %vm41_vm0, %v29_v15  ;;  %316 = vmatmul.msk.f32.gmra.mxu3 %vm41_vm0, %v32_v16  ;;  %v233_v16 = vand.u32 127, %v232_v14 }
  0x8e   :  { %v74_v17 = vpop.f32.mrf.mxu0 }
  0x8f   :  { %v162_v19 = vperm.slane %v74_v17, 0  ;;  %v156_v20 = vrot.slane %v74_v17, 2  ;;  %v159_v21 = vrot.slane %v74_v17, 5  ;;  %v155_v22 = vrot.slane %v74_v17, 1 }
  0x90   :  { %v130_v18 = vpop.f32.mrf.mxu1  ;;  %v157_v34 = vrot.slane %v74_v17, 3  ;;  %v160_v36 = vrot.slane %v74_v17, 6  ;;  %v158_v49 = vrot.slane %v74_v17, 4  ;;  %v161_v53 = vrot.slane %v74_v17, 7 }
  0x91   :  { %v178_v23 = vadd.f32 %v162_v19, %v130_v18  ;;  %v164_v24 = vperm.slane %v156_v20, 0  ;;  %v167_v25 = vperm.slane %v159_v21, 0  ;;  %v163_v27 = vperm.slane %v155_v22, 0 }
  0x92   :  { %v165_v39 = vperm.slane %v157_v34, 0  ;;  %v168_v41 = vperm.slane %v160_v36, 0  ;;  %v166_v56 = vperm.slane %v158_v49, 0  ;;  %v169_v59 = vperm.slane %v161_v53, 0 }
  0x93   :  { %330 = vtanh.f32 %v178_v23  ;;  %v234_v34 = vadd.s32 1, %v233_v16 }
  0x95   :  { %v136_v26 = vpop.f32.mrf.mxu2  ;;  %v145_v30 = vpop.f32.mrf.mxu3 }
  0x96   :  { %v180_v29 = vadd.f32 %v164_v24, %v136_v26  ;;  %v183_v31 = vadd.f32 %v167_v25, %v145_v30 }
  0x98   :  { %332 = vtanh.f32 %v180_v29  ;;  %v133_v33 = vpop.f32.mrf.mxu1 }
  0x99   :  { %334 = vtanh.f32 %v183_v31  ;;  %v179_v35 = vadd.f32 %v163_v27, %v133_v33  ;;  %v331_v37 = vpop.eup %330 }
  0x9a   :  { %v198_v38 = vmul.f32 %v331_v37, %v329_v32 }
  0x9b   :  { %336 = vtanh.f32 %v179_v35 }
  0x9c   :  { %v207_v42 = vsel %vm206_vm1, %v198_v38, 0.0 }
  0x9d   :  { %v139_v40 = vpop.f32.mrf.mxu2  ;;  %v148_v45 = vpop.f32.mrf.mxu3  ;;  %208 = vadd.xlane.f32.xlu0 %v207_v42 }
  0x9e   :  { %v333_v43 = vpop.eup %332  ;;  %v181_v44 = vadd.f32 %v165_v39, %v139_v40  ;;  %v184_v47 = vadd.f32 %v168_v41, %v148_v45 }
  0x9f   :  { %v335_v46 = vpop.eup %334  ;;  %v200_v48 = vmul.f32 %v333_v43, %v329_v32 }
  0xa0   :  { %338 = vtanh.f32 %v181_v44  ;;  %v203_v50 = vmul.f32 %v335_v46, %v329_v32 }
  0xa1   :  { %v337_v51 = vpop.eup %336  ;;  %340 = vtanh.f32 %v184_v47  ;;  %v213_v52 = vsel %vm206_vm1, %v200_v48, 0.0 }
  0xa2   :  { %214 = vadd.xlane.f32.xlu1 %v213_v52  ;;  %v199_v54 = vmul.f32 %v337_v51, %v329_v32  ;;  %v222_v55 = vsel %vm206_vm1, %v203_v50, 0.0 }
  0xa3   :  { %223 = vadd.xlane.f32.xlu2 %v222_v55 }
  0xa4   :  { %v210_v57 = vsel %vm206_vm1, %v199_v54, 0.0 }
  0xa5   :  { %v142_v58 = vpop.f32.mrf.mxu2  ;;  %v151_v62 = vpop.f32.mrf.mxu3  ;;  %211 = vadd.xlane.f32.xlu0 %v210_v57 }
  0xa6   :  { %v339_v60 = vpop.eup %338  ;;  %v182_v61 = vadd.f32 %v166_v56, %v142_v58  ;;  %v185_v0 = vadd.f32 %v169_v59, %v151_v62 }
  0xa7   :  { %v341_v63 = vpop.eup %340  ;;  %v201_v1 = vmul.f32 %v339_v60, %v329_v32 }
  0xa8   :  { %342 = vtanh.f32 %v182_v61  ;;  %v204_v3 = vmul.f32 %v341_v63, %v329_v32 }
  0xa9   :  { %344 = vtanh.f32 %v185_v0  ;;  %v216_v2 = vsel %vm206_vm1, %v201_v1, 0.0 }
  0xaa   :  { %217 = vadd.xlane.f32.xlu1 %v216_v2  ;;  %v225_v4 = vsel %vm206_vm1, %v204_v3, 0.0 }
  0xad   :  { %226 = vadd.xlane.f32.xlu0 %v225_v4 }
  0xae   :  { %v343_v5 = vpop.eup %342 }
  0xaf   :  { %v345_v6 = vpop.eup %344  ;;  %v202_v7 = vmul.f32 %v343_v5, %v329_v32 }
  0xb0   :  { %v205_v8 = vmul.f32 %v345_v6, %v329_v32 }
  0xb1   :  { %v219_v9 = vsel %vm206_vm1, %v202_v7, 0.0 }
  0xb2   :  { %220 = vadd.xlane.f32.xlu2 %v219_v9  ;;  %v228_v10 = vsel %vm206_vm1, %v205_v8, 0.0 }
  0xb3   :  { %229 = vadd.xlane.f32.xlu1 %v228_v10 }
  0xca   :  { %236 = vperm.xlu2 %327, %v231_v11  }
 0x110   :  { %v209_v12 = vpop.xlane.xlu0 %208 }
 0x111   :  { %v247_v18 = vperm.slane %v209_v12, %v233_v16 }
 0x115   :  { %v215_v13 = vpop.xlane.xlu1 %214 }
 0x116   :  { %v224_v17 = vpop.xlane.xlu2 %223  ;;  %v249_v23 = vperm.slane %v215_v13, %v233_v16 }
 0x117   :  { %v252_v28 = vperm.slane %v224_v17, %v233_v16 }
 0x118   :  { %v212_v15 = vpop.xlane.xlu0 %211 }
 0x119   :  { %v248_v19 = vperm.slane %v212_v15, %v233_v16 }
 0x11b   :  { %v256_v21 = vsel %vm255_vm2, %v248_v19, %v247_v18 }
 0x11c   :  { %v258_v25 = vsel %vm257_vm3, %v249_v23, %v256_v21 }
 0x11d   :  { %v218_v20 = vpop.xlane.xlu1 %217 }
 0x11e   :  { %v250_v22 = vperm.slane %v218_v20, %v233_v16 }
 0x120   :  { %v227_v26 = vpop.xlane.xlu0 %226  ;;  %v260_v29 = vsel %vm259_vm4, %v250_v22, %v258_v25 }
 0x121   :  { %v253_v31 = vperm.slane %v227_v26, %v233_v16 }
 0x125   :  { %v221_v24 = vpop.xlane.xlu2 %220 }
 0x126   :  { %v251_v27 = vperm.slane %v221_v24, %v233_v16  ;;  %v230_v32 = vpop.xlane.xlu1 %229 }
 0x127   :  { %v254_v36 = vperm.slane %v230_v32, %v233_v16 }
 0x128   :  { %v262_v30 = vsel %vm261_vm5, %v251_v27, %v260_v29 }
 0x129   :  { %v264_v33 = vsel %vm263_vm6, %v252_v28, %v262_v30 }
 0x12a   :  { %v266_v35 = vsel %vm265_vm7, %v253_v31, %v264_v33 }
 0x12b   :  { %v268_v38 = vsel %vm267_vm8, %v254_v36, %v266_v35 }
 0x12d   :  { %v237_v37 = vpop.permute.xlu2 %236 }
 0x12e   :  { %vm238_vm10 = vcmp.le.s32.totalorder %v234_v34, %v237_v37 }
 0x12f   :  { %v270_v39 = vsel %vm238_vm10, %v268_v38, -99999.0 }
 0x130   :  { %v272_v40 = vsel %vm271_vm9, %v270_v39, -inf }
 0x131   :  { %273 = vmax.xlane.f32.xlu0 %v272_v40 }
 0x1a4   :  { %v274_v41 = vpop.xlane.xlu0 %273 }
 0x1a5   :  { %v275_v42 = vsub.f32 %v270_v39, %v274_v41 }
 0x1a7   :  { %v276_v43 = vmul.f32 1.442695, %v275_v42 }
 0x1a9   :  { %346 = vpow2.f32 %v276_v43 }
 0x1af   :  { %v347_v44 = vpop.eup %346 }
 0x1b0   :  { %v278_v45 = vsel %vm271_vm9, %v347_v44, 0.0 }
 0x1b1   :  { %279 = vadd.xlane.f32.xlu1 %v278_v45 }
 0x224   :  { %v280_v46 = vpop.xlane.xlu1 %279 }
 0x225   :  { %348 = vrcp.f32 %v280_v46 }
 0x22b   :  { %v349_v47 = vpop.eup %348 }
 0x22c   :  { %v282_v48 = vmul.f32 %v349_v47, %v347_v44 }
 0x22e   :  { %283 = vst.msk [vmem:[#allocation2] sm:$0xff] %vm271_vm9, %v282_v48 }
 0x22f   :  { %294 = dma.vmem_to_hbm [thread:$0]  %s290_s30, 128, %s292_s9, [#allocation3]  }
 0x230   :  { %374 = dma.done.wait [#allocation3], 128  }
 0x231   :  { %375 = vsyncadd [#allocation3], 4294967168 }
 0x232   :  { %299 = vsyncpa [#allocation3], 1 }

</bundles_post_ra>
